<compile_context>
chip_gen: v7x
topology: tpu7x:2x2x1
jax: 0.10.0
libtpu: 0.0.40
codegen_flags: <defaults>
</compile_context>

<pallas_src>
import functools

import jax
import jax.numpy as jnp
import numpy as np
from jax.experimental import pallas as pl
from jax.experimental.pallas import tpu as pltpu


def _round_up(x, m):
    return ((x + m - 1) // m) * m


def _vfl_kernel(data_ref, wcat_ref, wlin_ref, bias_ref, out_ref):
    # Fused: (TB, D_pad) @ (D_pad, K_pad) @ (K_pad, T_pad) + (1, T_pad)
    feat = jnp.dot(data_ref[...], wcat_ref[...],
                   preferred_element_type=jnp.float32)
    out_ref[...] = (jnp.dot(feat.astype(wlin_ref.dtype), wlin_ref[...],
                            preferred_element_type=jnp.float32)
                    + bias_ref[...]).astype(out_ref.dtype)


@functools.partial(jax.jit, static_argnames=("compute_dtype",))
def vfl_forward(data, masks, active, w_blocks, b_blocks, w_lin, b_lin,
                compute_dtype=jnp.float32):
    """data: (B, D); masks: (U, 1, D) feature-split indicators; active: (U,)
    flags (False == feature_split is None); w_blocks: (U, D, H);
    b_blocks: (U, 1, H); w_lin: (T, H*U) (torch Linear layout); b_lin: (T,).
    Returns (B, T)."""
    B, D = data.shape
    U, _, H = w_blocks.shape
    T = w_lin.shape[0]
    K = U * H

    act = active.astype(w_blocks.dtype).reshape(U, 1, 1)
    # Fold feature-split masks + active flags into the block weights/biases.
    # Inactive users contribute exactly zero (matches data.new_zeros()).
    w_masked = w_blocks * jnp.transpose(masks, (0, 2, 1)) * act     # (U, D, H)
    b_masked = b_blocks * act                                       # (U, 1, H)

    # Undo the stack(dim=-1).reshape interleaving on the final linear:
    # concatenated index j = h*U + u.
    w_lin_r = jnp.transpose(w_lin.T.reshape(H, U, T), (1, 0, 2))    # (U, H, T)
    w_lin_cat = w_lin_r.reshape(K, T)                                # rows (u, h)
    w_cat = jnp.transpose(w_masked, (1, 0, 2)).reshape(D, K)         # cols (u, h)

    # Fold ALL biases into a single (1, T) epilogue vector.
    bias_total = b_masked.reshape(1, K) @ w_lin_cat + b_lin.reshape(1, T)

    # Pad to MXU / lane-friendly sizes (contractions and output multiple of 128).
    D_pad = _round_up(D, 128)
    K_pad = _round_up(K, 128)
    T_pad = _round_up(T, 128)
    TB = 128 if B >= 128 else _round_up(B, 8)
    B_pad = _round_up(B, TB)

    data_p = jnp.pad(data, ((0, B_pad - B), (0, D_pad - D))).astype(compute_dtype)
    w_cat_p = jnp.pad(w_cat, ((0, D_pad - D), (0, K_pad - K))).astype(compute_dtype)
    w_lin_p = jnp.pad(w_lin_cat, ((0, K_pad - K), (0, T_pad - T))).astype(compute_dtype)
    bias_p = jnp.pad(bias_total, ((0, 0), (0, T_pad - T))).astype(jnp.float32)

    out = pl.pallas_call(
        _vfl_kernel,
        out_shape=jax.ShapeDtypeStruct((B_pad, T_pad), data.dtype),
        grid_spec=pltpu.PrefetchScalarGridSpec(
            num_scalar_prefetch=0,
            grid=(B_pad // TB,),                       # batch tiles only
            in_specs=[
                pl.BlockSpec((TB, D_pad), lambda i: (i, 0)),      # data tile
                pl.BlockSpec((D_pad, K_pad), lambda i: (0, 0)),   # fused block weights
                pl.BlockSpec((K_pad, T_pad), lambda i: (0, 0)),   # fused final linear
                pl.BlockSpec((1, T_pad), lambda i: (0, 0)),       # folded bias
            ],
            out_specs=pl.BlockSpec((TB, T_pad), lambda i: (i, 0)),
        ),
        compiler_params=pltpu.CompilerParams(
            dimension_semantics=("parallel",)),        # shard batch tiles across TCs
    )(data_p, w_cat_p, w_lin_p, bias_p)
    return out[:B, :T]


def _reference(data, masks, active, w_blocks, b_blocks, w_lin, b_lin):
    # Pure-JAX reference mirroring the PyTorch forward (non-MIMIC path).
    feats = []
    U, _, H = w_blocks.shape
    B = data.shape[0]
    for u in range(U):
        if active[u]:
            xm = data * masks[u]
            feats.append(xm @ w_blocks[u] + b_blocks[u])
        else:
            feats.append(jnp.zeros((B, H), data.dtype))
    x = jnp.stack(feats, axis=-1)          # (B, H, U)
    x = x.reshape(B, -1)                   # (B, H*U), interleaved h*U + u
    return x @ w_lin.T + b_lin


if __name__ == "__main__":
    # Small, deterministic synthetic setup.
    B, D, H, U, T = 8, 32, 32, 4, 16

    key = jax.random.PRNGKey(0)
    k_data, k_wb, k_bb, k_wl, k_bl = jax.random.split(key, 5)

    data = jax.random.normal(k_data, (B, D), dtype=jnp.float32)

    # feature_split: disjoint 8-feature chunks per user; user 2 gets None
    # (=> exact-zero block output, like data.new_zeros in the module).
    active_list = [True, True, False, True]
    masks = np.zeros((U, 1, D), dtype=np.float32)
    chunk = D // U
    for u in range(U):
        if active_list[u]:
            masks[u, 0, u * chunk:(u + 1) * chunk] = 1.0
    masks = jnp.asarray(masks)
    active = jnp.asarray(active_list)

    # Per-user block parameters (deterministic synthetic init, uniform like torch).
    w_blocks = jax.random.uniform(k_wb, (U, D, H), jnp.float32,
                                  minval=-1.0 / np.sqrt(D), maxval=1.0 / np.sqrt(D))
    b_blocks = jax.random.uniform(k_bb, (U, 1, H), jnp.float32,
                                  minval=-1.0 / np.sqrt(D), maxval=1.0 / np.sqrt(D))

    # Final linear: torch nn.Linear(H*U, T) layout (T, H*U).
    w_lin = jax.random.uniform(k_wl, (T, H * U), jnp.float32,
                               minval=-1.0 / np.sqrt(H * U), maxval=1.0 / np.sqrt(H * U))
    b_lin = jax.random.uniform(k_bl, (T,), jnp.float32,
                               minval=-1.0 / np.sqrt(H * U), maxval=1.0 / np.sqrt(H * U))

    ref = _reference(data, masks, active_list, w_blocks, b_blocks, w_lin, b_lin)

    # f32 path: tight tolerance.
    out = vfl_forward(data, masks, active, w_blocks, b_blocks, w_lin, b_lin)
    out = jax.block_until_ready(out)
    np.testing.assert_allclose(np.asarray(out), np.asarray(ref),
                               rtol=1e-5, atol=1e-5)

    # bf16 path (v6e/v7x MXU fast path, f32 accumulation): loose tolerance.
    out_bf16 = vfl_forward(data, masks, active, w_blocks, b_blocks, w_lin, b_lin,
                           compute_dtype=jnp.bfloat16)
    out_bf16 = jax.block_until_ready(out_bf16)
    np.testing.assert_allclose(np.asarray(out_bf16), np.asarray(ref),
                               rtol=1e-1, atol=1e-1)

    # TODO(synk): MIMICL/MIMICM 3-D path (extra length/time axis) and
    # output['loss'] (cfg/loss_fn, ModelNet40 target repeat) are outside the
    # kernel scope and not implemented.
    print("KERNEL_OK")
</pallas_src>

<mosaic_0001>
module attributes {stable_mosaic.version = 11 : i64} {
  func.func @_vfl_kernel(%arg0: i32, %arg1: memref<8x128xf32, #tpu.memory_space<vmem>>, %arg2: memref<128x128xf32, #tpu.memory_space<vmem>>, %arg3: memref<128x128xf32, #tpu.memory_space<vmem>>, %arg4: memref<1x128xf32, #tpu.memory_space<vmem>>, %arg5: memref<8x128xf32, #tpu.memory_space<vmem>>) attributes {dimension_semantics = [#tpu.dimension_semantics<parallel>], iteration_bounds = array<i64: 1>, scalar_prefetch = 0 : i64, scratch_operands = 0 : i64, tpu.core_type = #tpu.core_type<tc>, window_params = [{transform_indices = @transform_0, window_bounds = array<i64: 8, 128>}, {pipeline_mode = #tpu.pipeline_mode<synchronous>, transform_indices = @transform_1, window_bounds = array<i64: 128, 128>}, {pipeline_mode = #tpu.pipeline_mode<synchronous>, transform_indices = @transform_2, window_bounds = array<i64: 128, 128>}, {pipeline_mode = #tpu.pipeline_mode<synchronous>, transform_indices = @transform_3, window_bounds = array<i64: 1, 128>}, {transform_indices = @transform_4, window_bounds = array<i64: 8, 128>}]} {
    %c0 = arith.constant 0 : index
    %c0_0 = arith.constant 0 : index
    %0 = vector.load %arg1[%c0, %c0_0] : memref<8x128xf32, #tpu.memory_space<vmem>>, vector<8x128xf32>
    %c0_1 = arith.constant 0 : index
    %c0_2 = arith.constant 0 : index
    %1 = vector.load %arg2[%c0_1, %c0_2] : memref<128x128xf32, #tpu.memory_space<vmem>>, vector<128x128xf32>
    %cst = arith.constant dense<0.000000e+00> : vector<8x128xf32>
    %2 = tpu.matmul %0, %1, %cst {dimension_numbers = #tpu.dot_dimension_numbers<[1], [0], [0], [1], [0, 0, 1, 1], [], []>} : vector<8x128xf32>, vector<128x128xf32>, vector<8x128xf32> -> vector<8x128xf32>
    %c0_3 = arith.constant 0 : index
    %c0_4 = arith.constant 0 : index
    %3 = vector.load %arg3[%c0_3, %c0_4] : memref<128x128xf32, #tpu.memory_space<vmem>>, vector<128x128xf32>
    %cst_5 = arith.constant dense<0.000000e+00> : vector<8x128xf32>
    %4 = tpu.matmul %2, %3, %cst_5 {dimension_numbers = #tpu.dot_dimension_numbers<[1], [0], [0], [1], [0, 0, 1, 1], [], []>} : vector<8x128xf32>, vector<128x128xf32>, vector<8x128xf32> -> vector<8x128xf32>
    %c0_6 = arith.constant 0 : index
    %c0_7 = arith.constant 0 : index
    %5 = vector.load %arg4[%c0_6, %c0_7] : memref<1x128xf32, #tpu.memory_space<vmem>>, vector<1x128xf32>
    %6 = vector.broadcast %5 : vector<1x128xf32> to vector<8x128xf32>
    %7 = arith.addf %4, %6 : vector<8x128xf32>
    %c0_8 = arith.constant 0 : index
    %c0_9 = arith.constant 0 : index
    %8 = vector.load %arg5[%c0_8, %c0_9] : memref<8x128xf32, #tpu.memory_space<vmem>>, vector<8x128xf32>
    tpu.vector_store %arg5[%c0_8, %c0_9], %7 {strides = array<i32>} : memref<8x128xf32, #tpu.memory_space<vmem>>, vector<8x128xf32>,
    return
  }
  func.func @transform_0(%arg0: i32) -> (i32, i32) {
    %c0_i32 = arith.constant 0 : i32
    %c0_i32_0 = arith.constant 0 : i32
    return %arg0, %c0_i32 : i32, i32
  }
  func.func @transform_1(%arg0: i32) -> (i32, i32) {
    %c0_i32 = arith.constant 0 : i32
    %c0_i32_0 = arith.constant 0 : i32
    %c0_i32_1 = arith.constant 0 : i32
    return %c0_i32, %c0_i32_0 : i32, i32
  }
  func.func @transform_2(%arg0: i32) -> (i32, i32) {
    %c0_i32 = arith.constant 0 : i32
    %c0_i32_0 = arith.constant 0 : i32
    %c0_i32_1 = arith.constant 0 : i32
    return %c0_i32, %c0_i32_0 : i32, i32
  }
  func.func @transform_3(%arg0: i32) -> (i32, i32) {
    %c0_i32 = arith.constant 0 : i32
    %c0_i32_0 = arith.constant 0 : i32
    %c0_i32_1 = arith.constant 0 : i32
    return %c0_i32, %c0_i32_0 : i32, i32
  }
  func.func @transform_4(%arg0: i32) -> (i32, i32) {
    %c0_i32 = arith.constant 0 : i32
    %c0_i32_0 = arith.constant 0 : i32
    return %arg0, %c0_i32 : i32, i32
  }
}

</mosaic_0001>

<bundles_post_ra>
// kernel: vfl_forward.1
= control target key start
LH: loop header
LB: loop body
LE: loop exit
PB: predicated region body
PF: predicated region fallthrough
CT: control target
= control target key end

     0   :  { %v394_v3 = vmov 0.0|0.0   ;;  %vm395_vm0 = vmmov 0   ;;  %v396_v6 = vmov 0.0   ;;  %s553_s0 = inlined_call_operand.vmem [shape: f32[8,128], index: 0, kind: input, shape index: {}]   ;;  %s554_s1 = inlined_call_operand.vmem [shape: f32[128,128], index: 1, kind: input, shape index: {}]   ;;  %s555_s2 = inlined_call_operand.vmem [shape: f32[128,128], index: 2, kind: input, shape index: {}]   ;;  %s556_s3 = inlined_call_operand.vmem [shape: f32[1,128], index: 3, kind: input, shape index: {}]   ;;  %s557_s4 = inlined_call_operand.hbm [shape: f32[8,128], index: 4, kind: output, shape index: {}]  }
   0x1   :  { %v19_v0 = vld [vmem:[%s554_s1] sm:$0xff]  ;;  %v20_v1 = vld [vmem:[%s554_s1 + $0x8] sm:$0xff]  ;;  %v21_v2 = vld [vmem:[%s554_s1 + $0x10] sm:$0xff]  ;;  %318 = vmatprep.subr.bf16.mxu0 %v394_v3  ;;  %280 = vmatprep.mubr.msk.f32.mxu0 %vm395_vm0, %v396_v6 }
   0x2   :  { %v319_v4 = vpack.c.bf16 %v20_v1, %v19_v0  ;;  %v22_v5 = vld [vmem:[%s554_s1 + $0x18] sm:$0xff]  ;;  %342 = vmatprep.subr.bf16.mxu1 %v394_v3  ;;  %315 = vmatprep.mubr.msk.f32.mxu1 %vm395_vm0, %v396_v6  ;;  %v23_v8 = vld [vmem:[%s554_s1 + $0x20] sm:$0xff]  ;;  %v24_v9 = vld [vmem:[%s554_s1 + $0x28] sm:$0xff] }
   0x3   :  { %v322_v7 = vpack.c.bf16 %v22_v5, %v21_v2  ;;  %v105_v10 = vld [vmem:[%s555_s2] sm:$0xff]  ;;  %v106_v11 = vld [vmem:[%s555_s2 + $0x8] sm:$0xff]  ;;  %v107_v12 = vld [vmem:[%s555_s2 + $0x10] sm:$0xff]  ;;  %v325_v14 = vpack.c.bf16 %v24_v9, %v23_v8 }
   0x4   :  { %320 = vmatpush3.bf16.msra.mxu0 %v319_v4  ;;  %v108_v13 = vld [vmem:[%s555_s2 + $0x18] sm:$0xff]  ;;  %v343_v15 = vpack.c.bf16 %v106_v11, %v105_v10  ;;  %v25_v16 = vld [vmem:[%s554_s1 + $0x30] sm:$0xff]  ;;  %v109_v19 = vld [vmem:[%s555_s2 + $0x20] sm:$0xff] }
   0x5   :  { %321 = vmatprep.subr.bf16.mxu0 %v394_v3  ;;  %v26_v17 = vld [vmem:[%s554_s1 + $0x38] sm:$0xff]  ;;  %v346_v18 = vpack.c.bf16 %v108_v13, %v107_v12  ;;  %v110_v20 = vld [vmem:[%s555_s2 + $0x28] sm:$0xff] }
   0x6   :  { %344 = vmatpush3.bf16.msra.mxu1 %v343_v15  ;;  %v328_v21 = vpack.c.bf16 %v26_v17, %v25_v16 }
   0x7   :  { %345 = vmatprep.subr.bf16.mxu1 %v394_v3 }
   0x8   :  { %323 = vmatpush3.bf16.msra.mxu0 %v322_v7 }
   0x9   :  { %324 = vmatprep.subr.bf16.mxu0 %v394_v3 }
   0xc   :  { %326 = vmatpush3.bf16.msra.mxu0 %v325_v14 }
   0xd   :  { %9 = vsyncpa [#allocation3], 0  ;;  %327 = vmatprep.subr.bf16.mxu0 %v394_v3  ;;  %v27_v22 = vld [vmem:[%s554_s1 + $0x40] sm:$0xff]  ;;  %v28_v23 = vld [vmem:[%s554_s1 + $0x48] sm:$0xff]  ;;  %347 = vmatpush3.bf16.msra.mxu1 %v346_v18  ;;  %v349_v24 = vpack.c.bf16 %v110_v20, %v109_v19  ;;  %s397_s30 = smov [#allocation2]  }
   0xe   :  { %348 = vmatprep.subr.bf16.mxu1 %v394_v3  ;;  %v111_v25 = vld [vmem:[%s555_s2 + $0x30] sm:$0xff]  ;;  %v112_v26 = vld [vmem:[%s555_s2 + $0x38] sm:$0xff]  ;;  %v331_v27 = vpack.c.bf16 %v28_v23, %v27_v22  ;;  %v113_v31 = vld [vmem:[%s555_s2 + $0x40] sm:$0xff] }
   0xf   :  { %v29_v28 = vld [vmem:[%s554_s1 + $0x50] sm:$0xff]  ;;  %v30_v29 = vld [vmem:[%s554_s1 + $0x58] sm:$0xff]  ;;  %v352_v30 = vpack.c.bf16 %v112_v26, %v111_v25  ;;  %v114_v32 = vld [vmem:[%s555_s2 + $0x48] sm:$0xff] }
  0x10   :  { %329 = vmatpush3.bf16.msra.mxu0 %v328_v21  ;;  %v334_v33 = vpack.c.bf16 %v30_v29, %v29_v28  ;;  %v31_v34 = vld [vmem:[%s554_s1 + $0x60] sm:$0xff]  ;;  %v32_v35 = vld [vmem:[%s554_s1 + $0x68] sm:$0xff]  ;;  %v355_v36 = vpack.c.bf16 %v114_v32, %v113_v31  ;;  %v115_v37 = vld [vmem:[%s555_s2 + $0x50] sm:$0xff] }
  0x11   :  { %330 = vmatprep.subr.bf16.mxu0 %v394_v3  ;;  %350 = vmatpush3.bf16.msra.mxu1 %v349_v24  ;;  %v116_v38 = vld [vmem:[%s555_s2 + $0x58] sm:$0xff]  ;;  %v337_v39 = vpack.c.bf16 %v32_v35, %v31_v34  ;;  %v33_v40 = vld [vmem:[%s554_s1 + $0x70] sm:$0xff]  ;;  %v117_v43 = vld [vmem:[%s555_s2 + $0x60] sm:$0xff] }
  0x12   :  { %351 = vmatprep.subr.bf16.mxu1 %v394_v3  ;;  %v34_v41 = vld [vmem:[%s554_s1 + $0x78] sm:$0xff]  ;;  %v358_v42 = vpack.c.bf16 %v116_v38, %v115_v37  ;;  %v118_v44 = vld [vmem:[%s555_s2 + $0x68] sm:$0xff]  ;;  %v119_v47 = vld [vmem:[%s555_s2 + $0x70] sm:$0xff] }
  0x13   :  { %v340_v45 = vpack.c.bf16 %v34_v41, %v33_v40  ;;  %v361_v46 = vpack.c.bf16 %v118_v44, %v117_v43  ;;  %v120_v48 = vld [vmem:[%s555_s2 + $0x78] sm:$0xff]  ;;  %v18_v49 = vld [vmem:[%s553_s0] sm:$0xff]  ;;  %s205_s2 = sshll.u32 %s397_s30, 4  ;;  %s206_s2 = int_to_ptr.vmem [resolvable:$true] %s205_s2 }
  0x14   :  { %332 = vmatpush3.bf16.msra.mxu0 %v331_v27  ;;  %v364_v50 = vpack.c.bf16 %v120_v48, %v119_v47  ;;  %v213_v53 = vld [vmem:[%s556_s3] ss:$0 sm:$0xff]  ;;  %s370_s0 = scalar_lea.vmem %s206_s2, 128  ;;  %p375_p1 = scmp.lt.s32.totalorder %s206_s2, %s206_s2 }
  0x15   :  { %333 = vmatprep.subr.bf16.mxu0 %v394_v3  ;;  %353 = vmatpush3.bf16.msra.mxu1 %v352_v30  ;;  %p371_p0 = scmp.ne.s32.totalorder %s206_s2, %s370_s0  ;;  %p376_p2 = scmp.lt.s32.totalorder %s370_s0, %s370_s0 }
  0x16   :  { %354 = vmatprep.subr.bf16.mxu1 %v394_v3 }
  0x17   :  { %p377_p3 = por %p376_p2, %p375_p1 }
  0x18   :  { %335 = vmatpush3.bf16.msra.mxu0 %v334_v33 }
  0x19   :  { %336 = vmatprep.subr.bf16.mxu0 %v394_v3  ;;  %356 = vmatpush3.bf16.msra.mxu1 %v355_v36  ;;  %p378_p4 = pnand %p377_p3, %p371_p0 }
  0x1a   :  { %357 = vmatprep.subr.bf16.mxu1 %v394_v3 }
  0x1c   :  { %338 = vmatpush3.bf16.msra.mxu0 %v337_v39 }
  0x1d   :  { %339 = vmatprep.subr.bf16.mxu0 %v394_v3  ;;  %359 = vmatpush3.bf16.msra.mxu1 %v358_v42 }
  0x1e   :  { %360 = vmatprep.subr.bf16.mxu1 %v394_v3 }
  0x20   :  { %341 = vmatpush3.bf16.msra.mxu0 %v340_v45 }
  0x21   :  { %362 = vmatpush3.bf16.msra.mxu1 %v361_v46 }
  0x22   :  { %363 = vmatprep.subr.bf16.mxu1 %v394_v3 }
  0x23   :  { %281 = vmatmul.mubr.f32.vlgmr.msra.gmra.mrb[0].mxu0 %v18_v49 }
  0x25   :  { %365 = vmatpush3.bf16.msra.mxu1 %v364_v50 }
  0xf6   :  { %v101_v51 = vpop.f32.mrb[0].mxu0 }
  0xf7   :  { %v282_v52 = vpop.f32.mrb[1].mxu0  ;;  %316 = vmatmul.mubr.f32.vlgmr.msra.gmra.mrb[0].mxu1 %v101_v51 }
 0x1ca   :  { %v194_v54 = vpop.f32.mrb[0].mxu1 }
 0x1cb   :  { %v195_v55 = vadd.f32 %v213_v53, %v194_v54  ;;  %v317_v56 = vpop.f32.mrb[1].mxu1 }
 0x1cd   :  { %198 = vst [vmem:[#allocation2] sm:$0xff] %v195_v55 }
 0x1ce   :  { %381 = shalt.err (!%p378_p4)
}
 0x1cf   :  { %s382_s7 = scalar_lea.hbm %s557_s4, 128 }
 0x1d0   :  { %p383_p5 = scmp.ne.s32.totalorder %s557_s4, %s382_s7  ;;  %p386_p6 = scmp.lt.u32.totalorder %s382_s7, %s557_s4 }
 0x1d2   :  { %p388_p7 = pnand %p386_p6, %p383_p5 }
 0x1d4   :  { %391 = shalt.err (!%p388_p7)
}
 0x1d5   :  { %208 = dma.vmem_to_hbm [thread:$0]  %s206_s2, 128, %s557_s4, [#allocation3]  }
 0x1d6   :  { %392 = dma.done.wait [#allocation3], 128  }
 0x1d7   :  { %393 = vsyncadd [#allocation3], 4294967168 }
 0x1d8   :  { %212 = vsyncpa [#allocation3], 1 }

</bundles_post_ra>
